<compile_context>
chip_gen: v5e
topology: v5e:2x2
jax: 0.10.0
libtpu: 0.0.40
codegen_flags: <defaults>
</compile_context>

<pallas_src>
import functools

import jax
import jax.numpy as jnp
from jax.experimental import pallas as pl
from jax.experimental.pallas import tpu as pltpu

_LANE = 128
_SUBLANE = 8


def _round_up(n, m):
    return ((n + m - 1) // m) * m


def make_mlp_kernel(num_layers, activations):
    """Pallas kernel: chain of bf16 matmuls (f32 accumulate) with optional ReLU."""
    assert num_layers == len(activations) and num_layers >= 1

    def kernel(x_ref, *rest):
        w_refs = rest[:num_layers]
        o_ref = rest[num_layers]
        h = x_ref[...].astype(jnp.bfloat16)              # MXU-native operand dtype
        for idx, (w_ref, act) in enumerate(zip(w_refs, activations)):
            acc = jnp.dot(h, w_ref[...], preferred_element_type=jnp.float32)
            if act == "relu":
                acc = jnp.maximum(acc, 0.0)              # ReLU on the f32 accumulator
            elif act != "none":
                raise ValueError(f"unsupported activation: {act}")
            if idx + 1 < num_layers:
                h = acc.astype(jnp.bfloat16)
            else:
                o_ref[...] = acc.astype(o_ref.dtype)     # lane-dense (…,128k) store

    return kernel


def simple_feedforward_nn_pallas(x, weights_io, activations, out_size):
    """Forward pass of SimpleFeedForwardNN in a single Pallas kernel.

    Args:
      x:           (batch, in_size) float32.
      weights_io:  list of kernel-layout bf16 weights, each (K, N_pad) with
                   N_pad a multiple of 128 (prepacked once in build_simple_ffnn_params).
      activations: list of 'relu' / 'none', one per layer.
      out_size:    true (unpadded) output feature count.
    """
    num_layers = len(weights_io)
    if num_layers == 0:                          # depth == 0 -> identity
        return x
    assert num_layers == len(activations)

    batch, in_size = x.shape
    assert weights_io[0].shape[0] == in_size
    padded_out = weights_io[-1].shape[1]

    # Whole-chain-in-one-kernel keeps every weight resident in VMEM; only valid
    # while the total weight footprint is small.
    weight_bytes = sum(int(w.size) * w.dtype.itemsize for w in weights_io)
    assert weight_bytes < 20 * 1024 * 1024, (
        "weights too large for fully-resident single-kernel MLP; tile K/N per "
        "layer or use pltpu.emit_pipeline over layers instead")
    # TODO(synk): per-layer K/N tiling (budgeted against v7x's 64 MiB VMEM /
    # 32 MiB scoped default) when out_size reaches the multi-thousand range.

    # Batch tiling: big row tiles amortize the ~0.35us per-step overhead; the
    # constant weight index_map means weights are DMA'd once and reused.
    tb = min(256, _round_up(batch, _SUBLANE))
    padded_batch = _round_up(batch, tb)
    if padded_batch != batch:
        x = jnp.pad(x, ((0, padded_batch - batch), (0, 0)))

    grid = (padded_batch // tb,)
    in_specs = [pl.BlockSpec((tb, in_size), lambda i: (i, 0))]
    in_specs += [pl.BlockSpec(w.shape, lambda i: (0, 0)) for w in weights_io]
    out_specs = pl.BlockSpec((tb, padded_out), lambda i: (i, 0))

    # Advisory scheduling hint: total matmul flops + HBM traffic for this call.
    flops = 2 * padded_batch * sum(int(w.shape[0]) * int(w.shape[1])
                                   for w in weights_io)
    bytes_accessed = (x.size * x.dtype.itemsize
                      + weight_bytes
                      + padded_batch * padded_out * 4)
    cost = pl.CostEstimate(flops=flops, transcendentals=0,
                           bytes_accessed=bytes_accessed)

    out = pl.pallas_call(
        make_mlp_kernel(num_layers, tuple(activations)),
        out_shape=jax.ShapeDtypeStruct((padded_batch, padded_out), jnp.float32),
        grid=grid,
        in_specs=in_specs,
        out_specs=out_specs,
        compiler_params=pltpu.CompilerParams(
            dimension_semantics=("parallel",)),   # v7x: 2 TCs split batch tiles
        cost_estimate=cost,
    )(x, *weights_io)

    return out[:batch, :out_size]


def init_linear_weight(key, out_features, in_features):
    """Deterministic PyTorch-Linear-style init: U(-1/sqrt(fan_in), 1/sqrt(fan_in))."""
    bound = 1.0 / jnp.sqrt(jnp.float32(in_features))
    return jax.random.uniform(
        key, (out_features, in_features), dtype=jnp.float32,
        minval=-bound, maxval=bound)


def build_simple_ffnn_params(key, depth, in_size, out_size,
                             activation="relu", last_activation="none"):
    """Replicates SimpleFeedForwardNN.__init__ layer structure (bias=False).

    Returns:
      weights_oi: PyTorch-layout f32 weights (out, in) -- for the reference.
      weights_io: kernel-layout weights: transposed ONCE to (in, out), zero-
                  padded so the lane dim is a multiple of 128, cast to bf16.
      layer_acts: per-layer activation names.
    """
    layer_dims, layer_acts = [], []
    if depth == 0:
        pass
    elif depth == 1:
        layer_dims.append((out_size, in_size))
        layer_acts.append(last_activation)
    elif depth >= 2:
        layer_dims.append((out_size, in_size))
        layer_acts.append(activation)
        for _ in range(depth - 1):
            layer_dims.append((out_size, out_size))
            layer_acts.append("relu")            # FCLayer default activation
        layer_dims.append((out_size, out_size))
        layer_acts.append(last_activation)
    else:
        raise ValueError("`depth` must be a positive integer")

    keys = jax.random.split(key, max(len(layer_dims), 1))
    weights_oi = [init_linear_weight(k, o, i)
                  for k, (o, i) in zip(keys, layer_dims)]

    padded_out = _round_up(out_size, _LANE)
    weights_io = []
    for li, w in enumerate(weights_oi):
        w_io = jnp.transpose(w)                          # (in, out) -- once, at init
        k_dim = in_size if li == 0 else padded_out       # hidden K padded too
        pad_k = k_dim - w_io.shape[0]
        pad_n = padded_out - w_io.shape[1]
        w_io = jnp.pad(w_io, ((0, pad_k), (0, pad_n)))   # zero pad -> exact math
        weights_io.append(w_io.astype(jnp.bfloat16))
    return weights_oi, weights_io, layer_acts


def reference_forward(x, weights_oi, activations):
    """Pure-JAX reference mirroring the kernel numerics (bf16 in, f32 accum)."""
    h = x
    for w, act in zip(weights_oi, activations):
        h = jnp.dot(h.astype(jnp.bfloat16),
                    jnp.transpose(w).astype(jnp.bfloat16),
                    preferred_element_type=jnp.float32)
        if act == "relu":
            h = jnp.maximum(h, 0.0)
    return h


if __name__ == "__main__":
    # Small shapes consistent with the module: depth=2 MLP, in_size=16, out_size=32.
    depth, in_size, out_size = 2, 16, 32
    batch = 8

    root_key = jax.random.PRNGKey(0)
    k_x, k_w = jax.random.split(root_key)

    x = jax.random.normal(k_x, (batch, in_size), dtype=jnp.float32)
    weights_oi, weights_io, acts = build_simple_ffnn_params(
        k_w, depth, in_size, out_size, activation="relu", last_activation="none")

    run = jax.jit(functools.partial(
        simple_feedforward_nn_pallas, activations=acts, out_size=out_size))
    out = jax.block_until_ready(run(x, weights_io))

    ref = reference_forward(x, weights_oi, acts)
    assert out.shape == (batch, out_size)
    assert jnp.allclose(out, ref, atol=5e-3, rtol=5e-3), "mismatch vs JAX reference"

    # Also exercise depth==0 (identity) and depth==1 (single layer) paths.
    _, w1_io, acts1 = build_simple_ffnn_params(k_w, 1, in_size, out_size)
    out1 = jax.block_until_ready(
        simple_feedforward_nn_pallas(x, w1_io, acts1, out_size))
    assert out1.shape == (batch, out_size)
    out0 = simple_feedforward_nn_pallas(x, [], [], in_size)
    assert out0 is x

    print("KERNEL_OK")
</pallas_src>

<mosaic_0001>
module attributes {stable_mosaic.version = 11 : i64} {
  func.func @kernel(%arg0: i32, %arg1: memref<8x16xf32, #tpu.memory_space<vmem>>, %arg2: memref<16x128xbf16, #tpu.memory_space<vmem>>, %arg3: memref<128x128xbf16, #tpu.memory_space<vmem>>, %arg4: memref<128x128xbf16, #tpu.memory_space<vmem>>, %arg5: memref<8x128xf32, #tpu.memory_space<vmem>>) attributes {dimension_semantics = [#tpu.dimension_semantics<parallel>], iteration_bounds = array<i64: 1>, scalar_prefetch = 0 : i64, scratch_operands = 0 : i64, tpu.core_type = #tpu.core_type<tc>, window_params = [{transform_indices = @transform_0, window_bounds = array<i64: 8, 16>}, {pipeline_mode = #tpu.pipeline_mode<synchronous>, transform_indices = @transform_1, window_bounds = array<i64: 16, 128>}, {pipeline_mode = #tpu.pipeline_mode<synchronous>, transform_indices = @transform_2, window_bounds = array<i64: 128, 128>}, {pipeline_mode = #tpu.pipeline_mode<synchronous>, transform_indices = @transform_3, window_bounds = array<i64: 128, 128>}, {transform_indices = @transform_4, window_bounds = array<i64: 8, 128>}]} {
    %c0 = arith.constant 0 : index
    %c0_0 = arith.constant 0 : index
    %0 = vector.load %arg1[%c0, %c0_0] : memref<8x16xf32, #tpu.memory_space<vmem>>, vector<8x16xf32>
    %1 = arith.truncf %0 : vector<8x16xf32> to vector<8x16xbf16>
    %c0_1 = arith.constant 0 : index
    %c0_2 = arith.constant 0 : index
    %2 = vector.load %arg2[%c0_1, %c0_2] : memref<16x128xbf16, #tpu.memory_space<vmem>>, vector<16x128xbf16>
    %cst = arith.constant dense<0.000000e+00> : vector<8x128xf32>
    %3 = tpu.matmul %1, %2, %cst {dimension_numbers = #tpu.dot_dimension_numbers<[1], [0], [0], [1], [0, 0, 1, 1], [], []>} : vector<8x16xbf16>, vector<16x128xbf16>, vector<8x128xf32> -> vector<8x128xf32>
    %cst_3 = arith.constant 0.000000e+00 : f32
    %4 = vector.broadcast %cst_3 : f32 to vector<8x128xf32>
    %5 = arith.maximumf %3, %4 : vector<8x128xf32>
    %6 = arith.truncf %5 : vector<8x128xf32> to vector<8x128xbf16>
    %c0_4 = arith.constant 0 : index
    %c0_5 = arith.constant 0 : index
    %7 = vector.load %arg3[%c0_4, %c0_5] : memref<128x128xbf16, #tpu.memory_space<vmem>>, vector<128x128xbf16>
    %cst_6 = arith.constant dense<0.000000e+00> : vector<8x128xf32>
    %8 = tpu.matmul %6, %7, %cst_6 {dimension_numbers = #tpu.dot_dimension_numbers<[1], [0], [0], [1], [0, 0, 1, 1], [], []>} : vector<8x128xbf16>, vector<128x128xbf16>, vector<8x128xf32> -> vector<8x128xf32>
    %cst_7 = arith.constant 0.000000e+00 : f32
    %9 = vector.broadcast %cst_7 : f32 to vector<8x128xf32>
    %10 = arith.maximumf %8, %9 : vector<8x128xf32>
    %11 = arith.truncf %10 : vector<8x128xf32> to vector<8x128xbf16>
    %c0_8 = arith.constant 0 : index
    %c0_9 = arith.constant 0 : index
    %12 = vector.load %arg4[%c0_8, %c0_9] : memref<128x128xbf16, #tpu.memory_space<vmem>>, vector<128x128xbf16>
    %cst_10 = arith.constant dense<0.000000e+00> : vector<8x128xf32>
    %13 = tpu.matmul %11, %12, %cst_10 {dimension_numbers = #tpu.dot_dimension_numbers<[1], [0], [0], [1], [0, 0, 1, 1], [], []>} : vector<8x128xbf16>, vector<128x128xbf16>, vector<8x128xf32> -> vector<8x128xf32>
    %c0_11 = arith.constant 0 : index
    %c0_12 = arith.constant 0 : index
    %14 = vector.load %arg5[%c0_11, %c0_12] : memref<8x128xf32, #tpu.memory_space<vmem>>, vector<8x128xf32>
    tpu.vector_store %arg5[%c0_11, %c0_12], %13 {strides = array<i32>} : memref<8x128xf32, #tpu.memory_space<vmem>>, vector<8x128xf32>,
    return
  }
  func.func @transform_0(%arg0: i32) -> (i32, i32) {
    %c0_i32 = arith.constant 0 : i32
    %c0_i32_0 = arith.constant 0 : i32
    return %arg0, %c0_i32 : i32, i32
  }
  func.func @transform_1(%arg0: i32) -> (i32, i32) {
    %c0_i32 = arith.constant 0 : i32
    %c0_i32_0 = arith.constant 0 : i32
    %c0_i32_1 = arith.constant 0 : i32
    return %c0_i32, %c0_i32_0 : i32, i32
  }
  func.func @transform_2(%arg0: i32) -> (i32, i32) {
    %c0_i32 = arith.constant 0 : i32
    %c0_i32_0 = arith.constant 0 : i32
    %c0_i32_1 = arith.constant 0 : i32
    return %c0_i32, %c0_i32_0 : i32, i32
  }
  func.func @transform_3(%arg0: i32) -> (i32, i32) {
    %c0_i32 = arith.constant 0 : i32
    %c0_i32_0 = arith.constant 0 : i32
    %c0_i32_1 = arith.constant 0 : i32
    return %c0_i32, %c0_i32_0 : i32, i32
  }
  func.func @transform_4(%arg0: i32) -> (i32, i32) {
    %c0_i32 = arith.constant 0 : i32
    %c0_i32_0 = arith.constant 0 : i32
    return %arg0, %c0_i32 : i32, i32
  }
}

</mosaic_0001>

<bundles_post_ra>
// kernel: simple_feedforward_nn_pallas.1
= control target key start
LH: loop header
LB: loop body
LE: loop exit
PB: predicated region body
PF: predicated region fallthrough
CT: control target
= control target key end

     0   :  { %9 = vsyncpa [#allocation3], 0  ;;  %s553_s0 = inlined_call_operand.hbm [shape: f32[8,16], index: 0, kind: input, shape index: {}]   ;;  %s554_s1 = inlined_call_operand.hbm [shape: bf16[16,128], index: 1, kind: input, shape index: {}]   ;;  %s555_s2 = inlined_call_operand.hbm [shape: bf16[128,128], index: 2, kind: input, shape index: {}]   ;;  %s556_s3 = inlined_call_operand.hbm [shape: bf16[128,128], index: 3, kind: input, shape index: {}]   ;;  %s557_s4 = inlined_call_operand.hbm [shape: f32[8,128], index: 4, kind: output, shape index: {}]  }
   0x1   :  { %10 = vsyncpa [#allocation6], 0 }
   0x2   :  { %11 = vsyncpa [#allocation9], 0  ;;  %s28_s17 = sshll.u32 %s554_s1, 4  ;;  %s29_s17 = int_to_ptr.hbm [resolvable:$true] %s28_s17 }
   0x3   :  { %12 = vsyncpa [#allocation4], 0  ;;  %s506_s18 = smov [#allocation5]   ;;  %s18_s22 = sshll.u32 %s553_s0, 4  ;;  %s19_s22 = int_to_ptr.hbm [resolvable:$true] %s18_s22 }
   0x4   :  { %s30_s19 = sshll.u32 %s506_s18, 4  ;;  %s507_s23 = smov 64   ;;  %s31_s19 = int_to_ptr.vmem [resolvable:$true] %s30_s19 }
   0x5   :  { %s508_s24 = smov 4   ;;  %s509_s25 = smov [#allocation2]  }
   0x6   :  { %36 = dma.hbm_to_vmem [thread:$0]  %s29_s17, 128, %s31_s19, [#allocation6], %s507_s23, %s507_s23, %s508_s24  }
   0x7   :  { %s20_s26 = sshll.u32 %s509_s25, 4  ;;  %s41_s29 = sshll.u32 %s555_s2, 4  ;;  %s21_s26 = int_to_ptr.vmem [resolvable:$true] %s20_s26  ;;  %s42_s29 = int_to_ptr.hbm [resolvable:$true] %s41_s29 }
   0x8   :  { %23 = dma.hbm_to_vmem [thread:$0]  %s19_s22, 128, %s21_s26, [#allocation3]  }
   0x9   :  { %s54_s5 = sshll.u32 %s556_s3, 4  ;;  %s510_s6 = smov [#allocation7]   ;;  %s55_s5 = int_to_ptr.hbm [resolvable:$true] %s54_s5 }
   0xa   :  { %s43_s7 = sshll.u32 %s510_s6, 4  ;;  %s511_s0 = smov [#allocation8]   ;;  %s44_s7 = int_to_ptr.vmem [resolvable:$true] %s43_s7 }
   0xb   :  { %49 = dma.hbm_to_vmem [thread:$0]  %s42_s29, 1024, %s44_s7, [#allocation6], %s507_s23, %s507_s23, %s508_s24  }
   0xc   :  { %s56_s8 = sshll.u32 %s511_s0, 4  ;;  %s57_s8 = int_to_ptr.vmem [resolvable:$true] %s56_s8 }
   0xd   :  { %62 = dma.hbm_to_vmem [thread:$0]  %s55_s5, 1024, %s57_s8, [#allocation9], %s507_s23, %s507_s23, %s508_s24  }
   0xe   :  { %498 = dma.done.wait [#allocation3], 128  }
   0xf   :  { %499 = vsyncadd [#allocation3], 4294967168 }
  0x10   :  { %500 = dma.done.wait [#allocation6], 1152  }
  0x11   :  { %501 = vsyncadd [#allocation6], 4294966144 }
  0x12   :  { %502 = dma.done.wait [#allocation9], 1024  }
  0x13   :  { %503 = vsyncadd [#allocation9], 4294966272  ;;  %v354_v0 = vld [vmem:[#allocation5] sm:$0xff]  ;;  %v80_v1 = vld [vmem:[#allocation2] sm:$0xff]  ;;  %vm90_vm0 = vcmask 130048   ;;  %s512_s2 = smov [#allocation10]  }
  0x14   :  { %v362_v2 = vld [vmem:[#allocation7 + $0x38] sm:$0xff]  ;;  %v81_v3 = vpack.c.bf16 %v80_v1, %v80_v1  ;;  %101 = vmatpush.bf16.msra.mxu0 %v354_v0  ;;  %v361_v4 = vld [vmem:[#allocation7 + $0x30] sm:$0xff]  ;;  %v360_v5 = vld [vmem:[#allocation7 + $0x28] sm:$0xff]  ;;  %s271_s3 = sshll.u32 %s512_s2, 4  ;;  %s273_s11 = sshll.u32 %s557_s4, 4  ;;  %s272_s3 = int_to_ptr.vmem [resolvable:$true] %s271_s3  ;;  %s274_s11 = int_to_ptr.hbm [resolvable:$true] %s273_s11 }
  0x15   :  { %173 = vmatpush.bf16.msra.mxu1 %v362_v2  ;;  %v359_v6 = vld [vmem:[#allocation7 + $0x20] sm:$0xff]  ;;  %v358_v7 = vld [vmem:[#allocation7 + $0x18] sm:$0xff]  ;;  %v357_v8 = vld [vmem:[#allocation7 + $0x10] sm:$0xff] }
  0x16   :  { %v356_v9 = vld [vmem:[#allocation7 + $0x8] sm:$0xff]  ;;  %v355_v10 = vld [vmem:[#allocation7] sm:$0xff]  ;;  %v370_v11 = vld [vmem:[#allocation8 + $0x38] sm:$0xff] }
  0x17   :  { %289 = vmatmul.msk.bf16.vlgmr.msra.gmra.mxu0 %vm90_vm0, %v81_v3  ;;  %252 = vmatpush.bf16.msra.mxu2 %v370_v11  ;;  %v369_v12 = vld [vmem:[#allocation8 + $0x30] sm:$0xff]  ;;  %v368_v13 = vld [vmem:[#allocation8 + $0x28] sm:$0xff]  ;;  %v367_v14 = vld [vmem:[#allocation8 + $0x20] sm:$0xff] }
  0x18   :  { %v366_v15 = vld [vmem:[#allocation8 + $0x18] sm:$0xff]  ;;  %v365_v16 = vld [vmem:[#allocation8 + $0x10] sm:$0xff]  ;;  %v364_v17 = vld [vmem:[#allocation8 + $0x8] sm:$0xff] }
  0x19   :  { %174 = vmatpush.bf16.msra.mxu1 %v361_v4  ;;  %v363_v22 = vld [vmem:[#allocation8] sm:$0xff] }
  0x1b   :  { %253 = vmatpush.bf16.msra.mxu2 %v369_v12 }
  0x1d   :  { %175 = vmatpush.bf16.msra.mxu1 %v360_v5 }
  0x1f   :  { %254 = vmatpush.bf16.msra.mxu2 %v368_v13 }
  0x21   :  { %176 = vmatpush.bf16.msra.mxu1 %v359_v6 }
  0x23   :  { %255 = vmatpush.bf16.msra.mxu2 %v367_v14 }
  0x25   :  { %177 = vmatpush.bf16.msra.mxu1 %v358_v7 }
  0x27   :  { %256 = vmatpush.bf16.msra.mxu2 %v366_v15 }
  0x29   :  { %178 = vmatpush.bf16.msra.mxu1 %v357_v8 }
  0x2b   :  { %257 = vmatpush.bf16.msra.mxu2 %v365_v16 }
  0x2d   :  { %179 = vmatpush.bf16.msra.mxu1 %v356_v9 }
  0x2f   :  { %258 = vmatpush.bf16.msra.mxu2 %v364_v17 }
  0x31   :  { %180 = vmatpush.bf16.msra.mxu1 %v355_v10 }
  0x33   :  { %259 = vmatpush.bf16.msra.mxu2 %v363_v22 }
  0x94   :  { %v103_v18 = vpop.f32.mrf.mxu0 }
  0x95   :  { %v107_v19 = vmax.f32 %v103_v18, 0.0 }
  0x97   :  { %v108_v20 = vpack.c.bf16 %v107_v19, %v107_v19 }
  0x99   :  { %181 = vmatmul.bf16.vlgmr.msra.gmra.mxu1 %v108_v20 }
  0x9c   :  { %v105_v21 = vpop.f32.mrf.mxu0 }
 0x116   :  { %v182_v23 = vpop.f32.mrf.mxu1 }
 0x117   :  { %v186_v24 = vmax.f32 %v182_v23, 0.0 }
 0x119   :  { %v187_v25 = vpack.c.bf16 %v186_v24, %v186_v24 }
 0x11b   :  { %260 = vmatmul.bf16.vlgmr.msra.gmra.mxu2 %v187_v25 }
 0x11e   :  { %v184_v26 = vpop.f32.mrf.mxu1 }
 0x19e   :  { %v261_v27 = vpop.f32.mrf.mxu2 }
 0x19f   :  { %265 = vst [vmem:[#allocation10] sm:$0xff] %v261_v27 }
 0x1a0   :  { %276 = dma.vmem_to_hbm [thread:$0]  %s272_s3, 128, %s274_s11, [#allocation4]  }
 0x1a6   :  { %v263_v28 = vpop.f32.mrf.mxu2 }
 0x1a7   :  { %504 = dma.done.wait [#allocation4], 128  }
 0x1a8   :  { %505 = vsyncadd [#allocation4], 4294967168 }
 0x1a9   :  { %281 = vsyncpa [#allocation3], 1 }
 0x1aa   :  { %282 = vsyncpa [#allocation6], 1 }
 0x1ab   :  { %283 = vsyncpa [#allocation9], 1 }
 0x1ac   :  { %284 = vsyncpa [#allocation4], 1 }

</bundles_post_ra>
